<compile_context>
chip_gen: v6e
topology: v6e:2x2x1
jax: 0.10.0
libtpu: 0.0.40
codegen_flags: <defaults>
</compile_context>

<pallas_src>
import jax
import jax.numpy as jnp
from jax.experimental import pallas as pl
from jax.experimental.pallas import tpu as pltpu


def _round_up(n, m):
    return ((n + m - 1) // m) * m


def _vmem_capacity_bytes():
    try:
        return pltpu.get_tpu_info().vmem_capacity_bytes
    except Exception:
        return None


def _pick_tile_t(T, cap):
    # Largest token tile <= cap (multiple of 8) that divides T exactly;
    # otherwise the largest cap-bounded tile (the wrapper pads T).
    cands = (1024, 512, 256, 128, 64, 32, 16, 8)
    for cand in cands:
        if cand <= cap and T % cand == 0:
            return cand
    for cand in cands:
        if cand <= cap and cand <= _round_up(T, 8):
            return cand
    return 8


def last_layer_kernel(x_ref, w_ref, b_ref, o_ref):
    # x_ref: (TILE_T, H)        token tile of one batch element
    # w_ref: (H, Out_pad)       per-batch folded weight  (1+scale)[:,None] * W^T
    # b_ref: (1, Out_pad) f32   per-batch folded bias    shift @ W^T + b
    # o_ref: (TILE_T, Out_pad)  lane-dense output tile
    x = x_ref[...].astype(jnp.float32)
    H = x.shape[-1]

    # LayerNorm (no affine, eps=1e-6), two-pass variance in f32.
    mean = jnp.sum(x, axis=-1, keepdims=True) * (1.0 / H)
    d = x - mean
    var = jnp.sum(d * d, axis=-1, keepdims=True) * (1.0 / H)
    normed = d * jax.lax.rsqrt(var + 1e-6)

    # Final (modulation-folded) linear on the MXU, f32 accumulation.
    out = jnp.dot(normed.astype(w_ref.dtype), w_ref[...],
                  preferred_element_type=jnp.float32)
    out = out + b_ref[...]
    o_ref[...] = out.astype(o_ref.dtype)


def last_layer(x, vec, w_ada, b_ada, w_lin, b_lin, tile_t=None):
    """x: (B, T, H); vec: (B, H); Linear weights in PyTorch (out, in) layout.

    For production, pass x in bf16 — the matmul path follows x.dtype.
    """
    B, T, H = x.shape
    Out = w_lin.shape[0]
    compute_dtype = x.dtype

    # --- adaLN modulation hoisted out of the kernel (tiny per-batch matmul) ---
    v = vec.astype(jnp.float32)
    silu = v * jax.nn.sigmoid(v)
    ada = silu @ w_ada.T.astype(jnp.float32) + b_ada.astype(jnp.float32)  # (B, 2H)
    shift, scale = ada[:, :H], ada[:, H:]

    # --- pre-transpose + lane-pad the final linear weight / bias (f32) ---
    Out_pad = max(128, _round_up(Out, 128))
    w_t = jnp.zeros((H, Out_pad), dtype=jnp.float32)
    w_t = w_t.at[:, :Out].set(w_lin.T.astype(jnp.float32))
    b_pad = jnp.zeros((Out_pad,), dtype=jnp.float32)
    b_pad = b_pad.at[:Out].set(b_lin.astype(jnp.float32))

    # --- fold the modulation into a per-batch weight / bias ---
    #   (shift + (1+scale)*normed) @ w_t + b
    #     == normed @ ((1+scale)[:,None]*w_t) + (shift @ w_t + b)
    w_b = ((1.0 + scale)[:, :, None] * w_t[None]).astype(compute_dtype)   # (B, H, Out_pad)
    bias_b = (shift @ w_t + b_pad[None]).reshape(B, 1, Out_pad)           # (B, 1, Out_pad) f32
    bias_b = bias_b.astype(jnp.float32)

    # --- tiling ---
    vmem_cap = _vmem_capacity_bytes()
    tile_cap = 1024 if (vmem_cap is not None and vmem_cap >= (100 << 20)) else 512
    TILE_T = tile_t or _pick_tile_t(T, tile_cap)
    # NOTE(v7x): for best 2-TC balance prefer TILE_T such that T // TILE_T is even.

    T_pad = _round_up(T, TILE_T)
    x_in = x if T_pad == T else jnp.pad(x, ((0, 0), (0, T_pad - T), (0, 0)))
    grid = (B, T_pad // TILE_T)

    # --- explicit VMEM budget (double-buffered tiles + f32 LN intermediates) ---
    itemsize = jnp.dtype(compute_dtype).itemsize
    vmem_needed = (
        2 * TILE_T * H * itemsize            # x tile, double-buffered
        + 2 * TILE_T * Out_pad * itemsize    # out tile, double-buffered
        + 2 * H * Out_pad * itemsize         # per-batch folded weight, double-buffered
        + 2 * 8 * Out_pad * 4                # folded bias
        + 2 * TILE_T * H * 4                 # f32 LN intermediates (x_f32, normed)
        + TILE_T * Out_pad * 4               # f32 accumulator
    )
    safe_cap = int(0.85 * vmem_cap) if vmem_cap is not None else (56 << 20)
    vmem_limit = min(safe_cap, int(1.4 * vmem_needed) + (4 << 20))

    out_padded = pl.pallas_call(
        last_layer_kernel,
        out_shape=jax.ShapeDtypeStruct((B, T_pad, Out_pad), compute_dtype),
        grid_spec=pltpu.PrefetchScalarGridSpec(
            num_scalar_prefetch=0,
            grid=grid,
            in_specs=[
                # x tile: leading batch dim squeezed -> kernel sees (TILE_T, H)
                pl.BlockSpec((pl.Squeezed(), TILE_T, H), lambda b, t: (b, t, 0)),
                # per-batch folded weight (re-DMAs only on batch change)
                pl.BlockSpec((pl.Squeezed(), H, Out_pad), lambda b, t: (b, 0, 0)),
                # per-batch folded bias
                pl.BlockSpec((pl.Squeezed(), 1, Out_pad), lambda b, t: (b, 0, 0)),
            ],
            out_specs=pl.BlockSpec((pl.Squeezed(), TILE_T, Out_pad),
                                   lambda b, t: (b, t, 0)),
        ),
        compiler_params=pltpu.CompilerParams(
            dimension_semantics=("parallel", "parallel"),
            vmem_limit_bytes=vmem_limit),
    )(x_in, w_b, bias_b)

    # TODO(synk): fold this slice into the consumer (unpatchify) to avoid the
    # extra HBM pass; kept here so the function returns the module's shape.
    return out_padded[:, :T, :Out]


def last_layer_ref(x, vec, w_ada, b_ada, w_lin, b_lin):
    # pure-JAX reference (mirrors the PyTorch module)
    silu = vec * jax.nn.sigmoid(vec)
    ada = silu @ w_ada.T + b_ada
    H = x.shape[-1]
    shift, scale = ada[:, :H], ada[:, H:]
    mean = jnp.mean(x, axis=-1, keepdims=True)
    var = jnp.mean((x - mean) ** 2, axis=-1, keepdims=True)
    normed = (x - mean) * jax.lax.rsqrt(var + 1e-6)
    mod = shift[:, None, :] + (1.0 + scale[:, None, :]) * normed
    return mod @ w_lin.T + b_lin


if __name__ == "__main__":
    # small shapes: batch=2, seq=8, hidden=128, patch_size=2, out_channels=4
    B, T, H = 2, 8, 128
    patch_size, out_channels = 2, 4
    Out = patch_size * patch_size * out_channels   # 16

    key = jax.random.PRNGKey(0)
    k_x, k_v, k_wa, k_ba, k_wl, k_bl = jax.random.split(key, 6)

    x = jax.random.normal(k_x, (B, T, H), dtype=jnp.float32)
    vec = jax.random.normal(k_v, (B, H), dtype=jnp.float32)

    # deterministic parameter init (Linear weights: (out_features, in_features))
    w_ada = 0.02 * jax.random.normal(k_wa, (2 * H, H), dtype=jnp.float32)
    b_ada = 0.01 * jax.random.normal(k_ba, (2 * H,), dtype=jnp.float32)
    w_lin = 0.02 * jax.random.normal(k_wl, (Out, H), dtype=jnp.float32)
    b_lin = 0.01 * jax.random.normal(k_bl, (Out,), dtype=jnp.float32)

    out = last_layer(x, vec, w_ada, b_ada, w_lin, b_lin)
    out = jax.block_until_ready(out)

    ref = last_layer_ref(x, vec, w_ada, b_ada, w_lin, b_lin)
    assert out.shape == (B, T, Out)
    assert jnp.allclose(out, ref, atol=1e-4, rtol=1e-4), "mismatch vs reference"

    print("KERNEL_OK")
</pallas_src>

<mosaic_0001>
module attributes {stable_mosaic.version = 11 : i64} {
  func.func @last_layer_kernel(%arg0: i32, %arg1: i32, %arg2: memref<1x8x128xf32, #tpu.memory_space<vmem>>, %arg3: memref<1x128x128xf32, #tpu.memory_space<vmem>>, %arg4: memref<1x1x128xf32, #tpu.memory_space<vmem>>, %arg5: memref<1x8x128xf32, #tpu.memory_space<vmem>>) attributes {dimension_semantics = [#tpu.dimension_semantics<parallel>, #tpu.dimension_semantics<parallel>], iteration_bounds = array<i64: 2, 1>, scalar_prefetch = 0 : i64, scratch_operands = 0 : i64, tpu.core_type = #tpu.core_type<tc>, window_params = [{transform_indices = @transform_0, window_bounds = array<i64: 1, 8, 128>}, {transform_indices = @transform_1, window_bounds = array<i64: 1, 128, 128>}, {transform_indices = @transform_2, window_bounds = array<i64: 1, 1, 128>}, {transform_indices = @transform_3, window_bounds = array<i64: 1, 8, 128>}]} {
    %c0 = arith.constant 0 : index
    %c0_0 = arith.constant 0 : index
    %c0_1 = arith.constant 0 : index
    %0 = vector.load %arg2[%c0, %c0_0, %c0_1] : memref<1x8x128xf32, #tpu.memory_space<vmem>>, vector<1x8x128xf32>
    %1 = vector.shape_cast %0 : vector<1x8x128xf32> to vector<8x128xf32>
    %cst = arith.constant dense<0.000000e+00> : vector<8xf32>
    %2 = vector.multi_reduction <add>, %1, %cst [1] : vector<8x128xf32> to vector<8xf32>
    %3 = vector.shape_cast %2 : vector<8xf32> to vector<8x1xf32>
    %cst_2 = arith.constant 7.812500e-03 : f32
    %4 = vector.broadcast %cst_2 : f32 to vector<8x1xf32>
    %5 = arith.mulf %3, %4 : vector<8x1xf32>
    %6 = vector.broadcast %5 : vector<8x1xf32> to vector<8x128xf32>
    %7 = arith.subf %1, %6 : vector<8x128xf32>
    %8 = arith.mulf %7, %7 : vector<8x128xf32>
    %cst_3 = arith.constant dense<0.000000e+00> : vector<8xf32>
    %9 = vector.multi_reduction <add>, %8, %cst_3 [1] : vector<8x128xf32> to vector<8xf32>
    %10 = vector.shape_cast %9 : vector<8xf32> to vector<8x1xf32>
    %cst_4 = arith.constant 7.812500e-03 : f32
    %11 = vector.broadcast %cst_4 : f32 to vector<8x1xf32>
    %12 = arith.mulf %10, %11 : vector<8x1xf32>
    %cst_5 = arith.constant 9.99999997E-7 : f32
    %13 = vector.broadcast %cst_5 : f32 to vector<8x1xf32>
    %14 = arith.addf %12, %13 : vector<8x1xf32>
    %15 = math.rsqrt %14 : vector<8x1xf32>
    %16 = vector.broadcast %15 : vector<8x1xf32> to vector<8x128xf32>
    %17 = arith.mulf %7, %16 : vector<8x128xf32>
    %c0_6 = arith.constant 0 : index
    %c0_7 = arith.constant 0 : index
    %c0_8 = arith.constant 0 : index
    %18 = vector.load %arg3[%c0_6, %c0_7, %c0_8] : memref<1x128x128xf32, #tpu.memory_space<vmem>>, vector<1x128x128xf32>
    %19 = vector.shape_cast %18 : vector<1x128x128xf32> to vector<128x128xf32>
    %cst_9 = arith.constant dense<0.000000e+00> : vector<8x128xf32>
    %20 = tpu.matmul %17, %19, %cst_9 {dimension_numbers = #tpu.dot_dimension_numbers<[1], [0], [0], [1], [0, 0, 1, 1], [], []>} : vector<8x128xf32>, vector<128x128xf32>, vector<8x128xf32> -> vector<8x128xf32>
    %c0_10 = arith.constant 0 : index
    %c0_11 = arith.constant 0 : index
    %c0_12 = arith.constant 0 : index
    %21 = vector.load %arg4[%c0_10, %c0_11, %c0_12] : memref<1x1x128xf32, #tpu.memory_space<vmem>>, vector<1x1x128xf32>
    %22 = vector.shape_cast %21 : vector<1x1x128xf32> to vector<1x128xf32>
    %23 = vector.broadcast %22 : vector<1x128xf32> to vector<8x128xf32>
    %24 = arith.addf %20, %23 : vector<8x128xf32>
    %c0_13 = arith.constant 0 : index
    %c0_14 = arith.constant 0 : index
    %c0_15 = arith.constant 0 : index
    %25 = vector.load %arg5[%c0_13, %c0_14, %c0_15] : memref<1x8x128xf32, #tpu.memory_space<vmem>>, vector<1x8x128xf32>
    %26 = vector.shape_cast %25 : vector<1x8x128xf32> to vector<8x128xf32>
    %27 = vector.shape_cast %24 : vector<8x128xf32> to vector<1x8x128xf32>
    tpu.vector_store %arg5[%c0_13, %c0_14, %c0_15], %27 {strides = array<i32>} : memref<1x8x128xf32, #tpu.memory_space<vmem>>, vector<1x8x128xf32>,
    return
  }
  func.func @transform_0(%arg0: i32, %arg1: i32) -> (i32, i32, i32) {
    %c0_i32 = arith.constant 0 : i32
    %c0_i32_0 = arith.constant 0 : i32
    return %arg0, %arg1, %c0_i32 : i32, i32, i32
  }
  func.func @transform_1(%arg0: i32, %arg1: i32) -> (i32, i32, i32) {
    %c0_i32 = arith.constant 0 : i32
    %c0_i32_0 = arith.constant 0 : i32
    %c0_i32_1 = arith.constant 0 : i32
    return %arg0, %c0_i32, %c0_i32_0 : i32, i32, i32
  }
  func.func @transform_2(%arg0: i32, %arg1: i32) -> (i32, i32, i32) {
    %c0_i32 = arith.constant 0 : i32
    %c0_i32_0 = arith.constant 0 : i32
    %c0_i32_1 = arith.constant 0 : i32
    return %arg0, %c0_i32, %c0_i32_0 : i32, i32, i32
  }
  func.func @transform_3(%arg0: i32, %arg1: i32) -> (i32, i32, i32) {
    %c0_i32 = arith.constant 0 : i32
    %c0_i32_0 = arith.constant 0 : i32
    return %arg0, %arg1, %c0_i32 : i32, i32, i32
  }
}

</mosaic_0001>

<bundles_post_ra>
// kernel: tpu_custom_call.1
= control target key start
LH: loop header
LB: loop body
LE: loop exit
PB: predicated region body
PF: predicated region fallthrough
CT: control target
= control target key end

     0   :  { %8 = vsyncpa [#allocation3], 0  ;;  %s1000_s0 = inlined_call_operand.hbm [shape: f32[2,8,128], index: 0, kind: input, shape index: {}]   ;;  %s1001_s1 = inlined_call_operand.hbm [shape: f32[2,128,128], index: 1, kind: input, shape index: {}]   ;;  %s1002_s2 = inlined_call_operand.vmem [shape: f32[2,1,128], index: 2, kind: input, shape index: {}]   ;;  %s1003_s3 = inlined_call_operand.hbm [shape: f32[2,8,128], index: 3, kind: output, shape index: {}]  }
   0x1   :  { %10 = vsyncpa [#allocation3 + $0x1], 0 }
   0x2   :  { %11 = vsyncpa [#allocation6], 0 }
   0x3   :  { %13 = vsyncpa [#allocation6 + $0x1], 0 }
   0x4   :  { %14 = vsyncpa [#allocation4], 0 }
   0x5   :  { %16 = vsyncpa [#allocation4 + $0x1], 0  ;;  %s803_s12 = smov 0   ;;  %s805_s13 = smov 0  }
   0x6   :  { %s807_s14 = smov 0   ;;  %s809_s15 = smov 0  }
   0x7   :  { %s811_s16 = smov 0   ;;  %s813_s17 = smov 0  }
   0x8 LB: > { %s490_s18 = sadd.s32 4294967295, %s774_s17   ;;  %s491_s19 = sadd.s32 4294967294, %s774_s17   ;;  %s774_s17 = sphi %s813_s17, %s22_s17   ;;  %s770_s16 = sphi %s811_s16, %s1015_s16   ;;  %s766_s15 = sphi %s809_s15, %s1014_s15   ;;  %s762_s14 = sphi %s807_s14, %s1013_s14   ;;  %s758_s13 = sphi %s805_s13, %s1012_s13   ;;  %s754_s12 = sphi %s803_s12, %s1011_s12  }
   0x9   : > { %s34_s20 = sadd.s32 1, %s770_s16  ;;  %s43_s21 = sadd.s32 1, %s762_s14 }
   0xa   : > { %p36_p0 = scmp.ge.s32.totalorder %s34_s20, 2  ;;  %p50_p1 = scmp.ne.s32.totalorder %s762_s14, %s758_s13 }
   0xb   : > { %p51_p2 = scmp.eq.s32.totalorder %s774_s17, 0  ;;  %p56_p3 = scmp.ne.s32.totalorder %s758_s13, %s754_s12 }
   0xc   : > { %s1017_s20 = smov (%p36_p0, %s34_s20), 0  ;;  %p57_p5 = scmp.eq.s32.totalorder %s490_s18, 0 }
   0xd   : > { %p844_p4 = por %p51_p2, %p50_p1  ;;  %s38_s23 = ssub.s32 %s770_s16, %s1017_s20 }
   0xe   : > { %p134_p6 = scmp.eq.s32.totalorder %s490_s18, 1  ;;  %p41_p7 = scmp.eq.s32.totalorder %s38_s23, 0 }
   0xf   : > { %p850_p8 = por %p57_p5, %p56_p3  ;;  %p140_p10 = scmp.eq.s32.totalorder %s491_s19, 1 }
  0x10   : > { %p854_p9 = por %p134_p6, %p50_p1  ;;  %p578_p13 = scmp.lt.s32.totalorder %s774_s17, 2 }
  0x11   : > { %s859_s26 = scalar_select %p41_p7, %s762_s14, %s43_s21  }
  0x12   : > { %p861_p11 = por %p140_p10, %p56_p3  ;;  %s868_s28 = sand.u32 1, %s762_s14  }
  0x13   : > { %s494_s29 = sshll.u32 %s868_s28, 3  ;;  %s495_s30 = sshll.u32 %s770_s16, 7 }
  0x14   : > { %s170_s6 = scalar_lea.hbm %s1000_s0, %s495_s30  ;;  %s164_s7 = scalar_lea.vmem [#allocation2], %s494_s29 }
  0x15   : > { %s172_s8 = sshll.u32 %s164_s7, 4  ;;  %p877_p0 = pnand %p578_p13, %p844_p4  ;;  %s173_s8 = int_to_ptr.vmem [resolvable:$true] %s172_s8 }
  0x16   : > { %p499_p1 = scmp.ge.s32.totalorder %s774_s17, 1  ;;  %p204_p2 = scmp.lt.s32.totalorder %s774_s17, 3 }
  0x17   : > { %s161_s10 = scalar_lea.sflag [#allocation3], %s868_s28  ;;  %p636_p3 = pneg %p877_p0 }
  0x18   : > { %s647_s11 = scalar_lea.vmem %s173_s8, 128  ;;  %s776_s18 = smov [#allocation2]  }
  0x19   : > { %p648_p5 = scmp.ne.s32.totalorder %s173_s8, %s647_s11  ;;  %s652_s19 = sshll.u32 %s776_s18, 4  ;;  %s653_s19 = int_to_ptr.vmem [resolvable:$false] %s652_s19 }
  0x1a   : > { %s654_s21 = scalar_lea.vmem %s653_s19, 256  ;;  %p655_p4 = scmp.lt.s32.totalorder %s173_s8, %s653_s19 }
  0x1b   : > { %p650_p6 = pnand %p648_p5, %p636_p3  ;;  %p656_p10 = scmp.lt.s32.totalorder %s654_s21, %s647_s11 }
  0x1d   : > { %p651_p7 = pneg %p650_p6  ;;  %p657_p13 = por %p656_p10, %p655_p4 }
  0x1f   : > { %p658_p12 = pnand %p657_p13, %p651_p7 }
  0x21   : > { %661 = shalt.err (!%p658_p12)
}
  0x22   : > { %570 = dma.hbm_to_vmem [thread:$0]  (!%p877_p0), %s170_s6, 128, %s173_s8, %s161_s10  }
  0x23   : > { %p895_p5 = pnand %p499_p1, %p204_p2  ;;  %s496_s23 = sshll.u32 %s868_s28, 7 }
  0x24   : > { %s508_s29 = sshll.u32 %s770_s16, 11  ;;  %s183_s7 = scalar_lea.vmem [#allocation5], %s496_s23 }
  0x25   : > { %s189_s5 = scalar_lea.hbm %s1001_s1, %s508_s29  ;;  %s190_s11 = sshll.u32 %s183_s7, 4  ;;  %s191_s11 = int_to_ptr.vmem [resolvable:$true] %s190_s11 }
  0x26   : > { %s180_s18 = scalar_lea.sflag [#allocation6], %s868_s28  ;;  %s675_s19 = scalar_lea.vmem %s191_s11, 2048 }
  0x27   : > { %p676_p12 = scmp.ne.s32.totalorder %s191_s11, %s675_s19  ;;  %s777_s6 = smov [#allocation5]  }
  0x28   : > { %s680_s8 = sshll.u32 %s777_s6, 4  ;;  %s681_s8 = int_to_ptr.vmem [resolvable:$false] %s680_s8 }
  0x29   : > { %p678_p6 = pnand %p676_p12, %p636_p3  ;;  %s682_s10 = scalar_lea.vmem %s681_s8, 4096 }
  0x2a   : > { %p683_p1 = scmp.lt.s32.totalorder %s191_s11, %s681_s8  ;;  %p684_p2 = scmp.lt.s32.totalorder %s682_s10, %s675_s19 }
  0x2b   : > { %p679_p7 = pneg %p678_p6 }
  0x2c   : > { %p685_p4 = por %p684_p2, %p683_p1 }
  0x2e   : > { %p686_p10 = pnand %p685_p4, %p679_p7 }
  0x30   : > { %689 = shalt.err (!%p686_p10)
}
  0x31   : > { %s778_s21 = smov 128   ;;  %s779_s23 = smov 8  }
  0x32   : > { %573 = dma.hbm_to_vmem [thread:$0]  (!%p877_p0), %s189_s5, 2048, %s191_s11, %s180_s18, %s778_s21, %s778_s21, %s779_s23  }
  0x33   : > { %208 = sbr.rel (%p895_p5) target bundleno = 571 (0x23b), region = 32  ;;  %s913_s28 = sand.u32 (!%p895_p5), 1, %s758_s13  }
  0x34   : > { %s500_s29 = sshll.u32 (!%p895_p5), %s913_s28, 3  ;;  %s211_s30 = scalar_lea.sflag (!%p895_p5), [#allocation3], %s913_s28 }
  0x35   : > { %s214_s4 = scalar_lea.vmem (!%p895_p5), [#allocation2], %s500_s29 }
  0x38   : > { %741 = dma.done.wait (%p850_p8), %s211_s30, 128  }
  0x39   : > { %743 = vsyncadd (%p850_p8), %s211_s30, 4294967168  ;;  %s501_s9 = sshll.u32 %s913_s28, 7  ;;  %s220_s22 = scalar_lea.sflag [#allocation6], %s913_s28 }
  0x3a   : > { %s925_s5 = scalar_lea.vmem [#allocation5], %s501_s9 }
  0x3b   : > { %745 = dma.done.wait (%p850_p8), %s220_s22, 2048  }
  0x3c   : > { %747 = vsyncadd (%p850_p8), %s220_s22, 4294965248  ;;  %v257_v0 = vld [vmem:[%s214_s4] sm:$0xff]  ;;  %v780_v2 = vmov 0.0   ;;  %v282_v4 = vld [vmem:[%s925_s5 + $0x68] sm:$0xff]  ;;  %vm781_vm0 = vmmov 0   ;;  %p254_p8 = scmp.lt.s32.totalorder %s766_s15, 1 }
  0x3d   : > { %258 = vadd.xlane.f32.xlu0 %v257_v0  ;;  %v284_v1 = vld [vmem:[%s925_s5 + $0x78] sm:$0xff]  ;;  %526 = vmatprep.subr.mxu0 %v780_v2  ;;  %v283_v3 = vld [vmem:[%s925_s5 + $0x70] sm:$0xff]  ;;  %v281_v5 = vld [vmem:[%s925_s5 + $0x60] sm:$0xff]  ;;  %s505_s19 = sshll.u32 %s766_s15, 7  ;;  %s253_s6 = scalar_lea.vmem [#allocation7], %s500_s29 }
  0x3e   : > { %527 = vmatpush3.msra.mxu0 %v284_v1  ;;  %v280_v6 = vld [vmem:[%s925_s5 + $0x58] sm:$0xff]  ;;  %v279_v7 = vld [vmem:[%s925_s5 + $0x50] sm:$0xff]  ;;  %v278_v12 = vld [vmem:[%s925_s5 + $0x48] sm:$0xff]  ;;  %558 = vmatprep.mubr.msk.f32.mxu0 %vm781_vm0, %v780_v2  ;;  %s255_s24 = scalar_select %p254_p8, %s766_s15, 1 }
  0x3f   : > { %528 = vmatprep.subr.mxu0 %v780_v2  ;;  %v277_v13 = vld [vmem:[%s925_s5 + $0x40] sm:$0xff]  ;;  %v276_v14 = vld [vmem:[%s925_s5 + $0x38] sm:$0xff]  ;;  %v275_v15 = vld [vmem:[%s925_s5 + $0x30] sm:$0xff]  ;;  %s378_s8 = sshll.u32 %s253_s6, 4  ;;  %s958_s23 = scalar_lea.hbm %s1003_s3, %s505_s19  ;;  %s379_s8 = int_to_ptr.vmem [resolvable:$true] %s378_s8 }
  0x40   : > { %529 = vmatpush3.msra.mxu0 %v283_v3  ;;  %v274_v16 = vld [vmem:[%s925_s5 + $0x28] sm:$0xff]  ;;  %v273_v17 = vld [vmem:[%s925_s5 + $0x20] sm:$0xff]  ;;  %v272_v18 = vld [vmem:[%s925_s5 + $0x18] sm:$0xff]  ;;  %s256_s18 = scalar_lea.vmem %s1002_s2, %s255_s24  ;;  %s364_s30 = scalar_lea.sflag [#allocation4], %s913_s28 }
  0x41   : > { %530 = vmatprep.subr.mxu0 %v780_v2  ;;  %v271_v19 = vld [vmem:[%s925_s5 + $0x10] sm:$0xff]  ;;  %v270_v20 = vld [vmem:[%s925_s5 + $0x8] sm:$0xff]  ;;  %v269_v21 = vld [vmem:[%s925_s5] sm:$0xff]  ;;  %s690_s4 = scalar_lea.vmem %s379_s8, 128  ;;  %s782_s15 = smov [#allocation7]  }
  0x42   : > { %531 = vmatpush3.msra.mxu0 %v282_v4  ;;  %v503_v27 = vld [vmem:[%s256_s18] ss:$0 sm:$0xff]  ;;  %p691_p0 = scmp.ne.s32.totalorder %s379_s8, %s690_s4  ;;  %s694_s9 = sshll.u32 %s782_s15, 4  ;;  %s695_s9 = int_to_ptr.vmem [resolvable:$false] %s694_s9 }
  0x43   : > { %532 = vmatprep.subr.mxu0 %v780_v2  ;;  %s696_s29 = scalar_lea.vmem %s695_s9, 256  ;;  %p697_p5 = scmp.lt.s32.totalorder %s379_s8, %s695_s9 }
  0x44   : > { %533 = vmatpush3.msra.mxu0 %v281_v5  ;;  %p692_p3 = pnand %p691_p0, %p854_p9  ;;  %p698_p12 = scmp.lt.s32.totalorder %s696_s29, %s690_s4 }
  0x45   : > { %534 = vmatprep.subr.mxu0 %v780_v2 }
  0x46   : > { %535 = vmatpush3.msra.mxu0 %v280_v6  ;;  %p693_p13 = pneg %p692_p3  ;;  %p699_p6 = por %p698_p12, %p697_p5 }
  0x47   : > { %536 = vmatprep.subr.mxu0 %v780_v2 }
  0x48   : > { %537 = vmatpush3.msra.mxu0 %v279_v7  ;;  %p700_p7 = pnand %p699_p6, %p693_p13 }
  0x49   : > { %538 = vmatprep.subr.mxu0 %v780_v2 }
  0x4a   : > { %539 = vmatpush3.msra.mxu0 %v278_v12 }
  0x4b   : > { %540 = vmatprep.subr.mxu0 %v780_v2 }
  0x4c   : > { %541 = vmatpush3.msra.mxu0 %v277_v13 }
  0x4d   : > { %542 = vmatprep.subr.mxu0 %v780_v2 }
  0x4e   : > { %543 = vmatpush3.msra.mxu0 %v276_v14 }
  0x4f   : > { %544 = vmatprep.subr.mxu0 %v780_v2 }
  0x50   : > { %545 = vmatpush3.msra.mxu0 %v275_v15 }
  0x51   : > { %546 = vmatprep.subr.mxu0 %v780_v2 }
  0x52   : > { %547 = vmatpush3.msra.mxu0 %v274_v16 }
  0x53   : > { %548 = vmatprep.subr.mxu0 %v780_v2 }
  0x54   : > { %549 = vmatpush3.msra.mxu0 %v273_v17 }
  0x55   : > { %550 = vmatprep.subr.mxu0 %v780_v2 }
  0x56   : > { %551 = vmatpush3.msra.mxu0 %v272_v18 }
  0x57   : > { %552 = vmatprep.subr.mxu0 %v780_v2 }
  0x58   : > { %553 = vmatpush3.msra.mxu0 %v271_v19 }
  0x59   : > { %554 = vmatprep.subr.mxu0 %v780_v2 }
  0x5a   : > { %555 = vmatpush3.msra.mxu0 %v270_v20 }
  0x5b   : > { %556 = vmatprep.subr.mxu0 %v780_v2 }
  0x5c   : > { %557 = vmatpush3.msra.mxu0 %v269_v21 }
  0xc6   : > { %v259_v8 = vpop.xlane.xlu0 %258 }
  0xc7   : > { %v260_v9 = vmul.f32 0.0078125, %v259_v8 }
  0xc9   : > { %v261_v10 = vsub.f32 %v257_v0, %v260_v9 }
  0xcb   : > { %v262_v11 = vmul.f32 %v261_v10, %v261_v10 }
  0xcd   : > { %263 = vadd.xlane.f32.xlu0 %v262_v11 }
 0x156   : > { %v264_v22 = vpop.xlane.xlu0 %263 }
 0x157   : > { %v265_v23 = vmul.f32 0.0078125, %v264_v22 }
 0x159   : > { %v266_v24 = vadd.f32 1e-06, %v265_v23 }
 0x15b   : > { %632 = vrsqrt.f32 %v266_v24 }
 0x168   : > { %v633_v25 = vpop.eup %632 }
 0x169   : > { %v268_v26 = vmul.f32 %v633_v25, %v261_v10 }
 0x16b   : > { %559 = vmatmul.mubr.f32.vlgmr.msra.gmra.mxu0 %v268_v26 }
 0x22b   : > { %v358_v28 = vpop.f32.mrf.mxu0 }
 0x22c   : > { %v359_v29 = vadd.f32 %v503_v27, %v358_v28 }
 0x22d   : > { %v560_v30 = vpop.f32.mrf.mxu0 }
 0x22e   : > { %362 = vst [vmem:[%s253_s6] sm:$0xff] %v359_v29 }
 0x22f   : > { %703 = shalt.err (!%p700_p7)
}
 0x230   : > { %s704_s22 = scalar_lea.hbm %s958_s23, 128  ;;  %s708_s24 = scalar_lea.hbm %s1003_s3, 256 }
 0x231   : > { %p705_p1 = scmp.ne.s32.totalorder %s958_s23, %s704_s22  ;;  %p709_p10 = scmp.lt.s32.totalorder %s958_s23, %s1003_s3 }
 0x232   : > { %p710_p8 = scmp.lt.s32.totalorder %s708_s24, %s704_s22 }
 0x233   : > { %p706_p2 = pnand %p705_p1, %p854_p9 }
 0x234   : > { %p711_p0 = por %p710_p8, %p709_p10 }
 0x235   : > { %p707_p4 = pneg %p706_p2 }
 0x237   : > { %p712_p3 = pnand %p711_p0, %p707_p4 }
 0x239   : > { %715 = shalt.err (!%p712_p3)
}
 0x23a   : > { %565 = dma.vmem_to_hbm [thread:$0]  (%p854_p9), %s379_s8, 128, %s958_s23, %s364_s30  }
 0x23b PF: > { %s390_s18 = sand.u32 1, %s754_s12   ;;  %p1010_p13 = scmp.ge.s32.totalorder %s774_s17, 2 }
 0x23c   : > { %s391_s19 = scalar_lea.sflag [#allocation4], %s390_s18 }
 0x23d   : > { %p575_p5 = pnand %p1010_p13, %p861_p11 }
 0x23f   : > { %p576_p12 = pneg %p575_p5 }
 0x241   : > { %749 = dma.done.wait (%p576_p12), %s391_s19, 128  }
 0x242   : > { %751 = vsyncadd (%p576_p12), %s391_s19, 4294967168  ;;  %s22_s17 = sadd.s32 1, %s774_s17   ;;  %s1011_s12 = smov %s758_s13 }
 0x243   : > { %p19_p6 = scmp.ge.s32.totalorder %s22_s17, 4   ;;  %s1012_s13 = smov %s762_s14 }
 0x244   : > { %s1013_s14 = smov %s859_s26  ;;  %s1014_s15 = smov %s770_s16 }
 0x245   : > { %s1015_s16 = smov %s1017_s20  ;;  %21 = sbr.rel (!%p19_p6) target bundleno = 8 (0x8), region = 93 }
 0x24a   :  { %396 = vsyncpa [#allocation3], 1 }
 0x24b   :  { %398 = vsyncpa [#allocation3 + $0x1], 1 }
 0x24c   :  { %399 = vsyncpa [#allocation6], 1 }
 0x24d   :  { %401 = vsyncpa [#allocation6 + $0x1], 1 }
 0x24e   :  { %402 = vsyncpa [#allocation4], 1 }
 0x24f   :  { %404 = vsyncpa [#allocation4 + $0x1], 1 }

</bundles_post_ra>
